<compile_context>
chip_gen: v5e
topology: v5e:2x2
jax: 0.10.0
libtpu: 0.0.40
codegen_flags: <defaults>
</compile_context>

<pallas_src>
import functools

import jax
import jax.numpy as jnp
from jax.experimental import pallas as pl
from jax.experimental.pallas import tpu as pltpu


# ----------------------------------------------------------------------------- kernels


def planar_flow_kernel(z_ref, wu_ref, b_ref, o_ref):
    """Unpacked path (D is a full block width, ideally D % 128 == 0)."""
    z = z_ref[...].astype(jnp.float32)          # (tn, D)
    wu = wu_ref[...].astype(jnp.float32)        # (2, D): row 0 = w, row 1 = u
    w = wu[0:1, :]
    u = wu[1:2, :]
    b = b_ref[0]                                # f32 scalar from SMEM

    # Per-row <z, w>: VPU multiply + lane reduce (no point wasting the MXU on a
    # 1-column result); tanh goes to the EUP.  Kernel is HBM-bound anyway.
    linear = jnp.sum(z * w, axis=-1, keepdims=True) + b      # (tn, 1) f32
    o_ref[...] = (z + u * jnp.tanh(linear)).astype(o_ref.dtype)


def planar_flow_packed_kernel(z_ref, wmat_ref, u_ref, b_ref, o_ref):
    """Lane-dense path for D < 128: k = 128//D rows packed per 128-wide row.

    wmat[i, j] = w_tiled[i] if i and j fall in the same length-D group else 0,
    so (z_packed @ wmat)[r, j] = <z_row_of_group(j), w>, already broadcast to
    every lane of its group.  One fully aligned 128x128 MXU matmul per tile.
    """
    z = z_ref[...].astype(jnp.float32)          # (tn, 128)
    wm = wmat_ref[...]                          # (128, 128) f32
    u = u_ref[...].astype(jnp.float32)          # (1, 128)  (u tiled k times)
    b = b_ref[0]

    linear = jnp.dot(z, wm, preferred_element_type=jnp.float32) + b   # (tn, 128)
    o_ref[...] = (z + u * jnp.tanh(linear)).astype(o_ref.dtype)


# ----------------------------------------------------------------------------- wrapper


def _vmem_capacity_bytes():
    """Physical per-core VMEM; conservative 64 MiB (v7x) fallback."""
    try:
        cap = int(pltpu.get_tpu_info().vmem_capacity_bytes)
        if cap > 0:
            return cap
    except Exception:
        pass
    return 64 * 1024 * 1024


def _pick_batch_tile(n_rows, row_bytes, tile_budget_bytes, itemsize):
    """Largest batch tile under the per-buffer byte budget, >= 4 grid steps."""
    tn = max(1, tile_budget_bytes // max(1, row_bytes))
    # >= 4 grid steps when the batch allows (>= 2 pipelined steps per v7x TC).
    tn = min(tn, max(1, pl.cdiv(n_rows, 4)))
    sub = max(8, 32 // itemsize)                # sublane packing: 8 f32, 16 bf16
    tn = max(sub, (tn // sub) * sub)
    if tn >= n_rows:
        tn = n_rows                             # single full block (always legal)
    return int(tn)


def planar_flow(z, w, u, b, *, tn=None):
    n, d = z.shape
    dtype = z.dtype
    itemsize = jnp.dtype(dtype).itemsize

    # Lane-dense packing for narrow feature dims: fold k = 128 // D consecutive
    # rows into one 128-lane row.  Row-major reshape => no extra HBM traffic.
    k = 1
    if d < 128 and 128 % d == 0 and n % (128 // d) == 0:
        k = 128 // d
    d_eff = k * d
    n_rows = n // k

    # Generation-aware VMEM budgets.
    vmem_cap = _vmem_capacity_bytes()
    # Per grid step: 2 double-buffered copies each of the z tile and out tile.
    tile_budget = (vmem_cap * 3 // 8) // 4
    if tn is None:
        tn = _pick_batch_tile(n_rows, d_eff * itemsize, tile_budget, itemsize)
    tn = min(int(tn), n_rows)
    tile_bytes = tn * d_eff * itemsize
    vmem_limit = min(vmem_cap * 3 // 4,
                     max(32 * 1024 * 1024, 4 * tile_bytes + 2 * 1024 * 1024))

    grid = (pl.cdiv(n_rows, tn),)               # ragged tail handled by Pallas
    b_smem = jnp.reshape(b, (1,)).astype(jnp.float32)
    cparams = pltpu.CompilerParams(
        dimension_semantics=("parallel",),
        vmem_limit_bytes=int(vmem_limit))

    if k == 1:
        # w and u packed into a single replicated (2, D) block.
        wu = jnp.concatenate(
            [jnp.reshape(w, (1, d)), jnp.reshape(u, (1, d))], axis=0).astype(dtype)
        return pl.pallas_call(
            planar_flow_kernel,
            out_shape=jax.ShapeDtypeStruct((n, d), dtype),
            grid=grid,
            in_specs=[
                pl.BlockSpec((tn, d), lambda i: (i, 0)),             # z batch tile
                pl.BlockSpec((2, d), lambda i: (0, 0)),              # [w; u] replicated
                pl.BlockSpec(memory_space=pltpu.MemorySpace.SMEM),   # b scalar
            ],
            out_specs=pl.BlockSpec((tn, d), lambda i: (i, 0)),
            compiler_params=cparams,
        )(z, wu, b_smem)

    # Lane-dense packed path (D < 128, N divisible by k).
    z_p = z.reshape(n_rows, d_eff)                               # free reshape
    w_tiled = jnp.tile(jnp.reshape(w, (1, d)).astype(jnp.float32), (1, k))   # (1, 128)
    u_tiled = jnp.tile(jnp.reshape(u, (1, d)), (1, k)).astype(dtype)         # (1, 128)
    grp = jnp.arange(d_eff) // d
    same = grp[:, None] == grp[None, :]
    wmat = jnp.where(same, w_tiled.reshape(d_eff, 1), 0.0).astype(jnp.float32)

    out = pl.pallas_call(
        planar_flow_packed_kernel,
        out_shape=jax.ShapeDtypeStruct((n_rows, d_eff), dtype),
        grid=grid,
        in_specs=[
            pl.BlockSpec((tn, d_eff), lambda i: (i, 0)),            # packed z tile
            pl.BlockSpec((d_eff, d_eff), lambda i: (0, 0)),         # group-masked W
            pl.BlockSpec((1, d_eff), lambda i: (0, 0)),             # u tiled
            pl.BlockSpec(memory_space=pltpu.MemorySpace.SMEM),      # b scalar
        ],
        out_specs=pl.BlockSpec((tn, d_eff), lambda i: (i, 0)),
        compiler_params=cparams,
    )(z_p, wmat, u_tiled, b_smem)
    return out.reshape(n, d)                                        # free reshape


def planar_flow_ref(z, w, u, b):
    linear = z @ w.T + jnp.reshape(b, (1, 1))
    return z + u * jnp.tanh(linear)


# ----------------------------------------------------------------------------- demo


if __name__ == "__main__":
    key = jax.random.PRNGKey(0)
    k_z, k_w, k_u, k_b, k_z2, k_z3 = jax.random.split(key, 6)

    # Small shapes matching the module: batch=16, hidden D=32 (lane-dense packed path).
    N, D = 16, 32
    z = jax.random.normal(k_z, (N, D), dtype=jnp.float32)
    w = jax.random.uniform(k_w, (1, D), minval=-0.01, maxval=0.01, dtype=jnp.float32)
    u = jax.random.uniform(k_u, (1, D), minval=-0.01, maxval=0.01, dtype=jnp.float32)
    b = jax.random.uniform(k_b, (1,), minval=-0.01, maxval=0.01, dtype=jnp.float32)

    out = jax.block_until_ready(planar_flow(z, w, u, b))
    ref = planar_flow_ref(z, w, u, b)
    assert out.shape == (N, D)
    assert jnp.allclose(out, ref, atol=1e-5, rtol=1e-5), "mismatch (N=16, D=32, packed)"

    # Ragged batch with lane-dense D=128 (unpacked path, masked tail block, no pad/slice).
    N2, D2 = 20, 128
    z2 = jax.random.normal(k_z2, (N2, D2), dtype=jnp.float32)
    w2 = jax.random.uniform(k_w, (1, D2), minval=-0.01, maxval=0.01, dtype=jnp.float32)
    u2 = jax.random.uniform(k_u, (1, D2), minval=-0.01, maxval=0.01, dtype=jnp.float32)
    out2 = jax.block_until_ready(planar_flow(z2, w2, u2, b))
    ref2 = planar_flow_ref(z2, w2, u2, b)
    assert out2.shape == (N2, D2)
    assert jnp.allclose(out2, ref2, atol=1e-5, rtol=1e-5), "mismatch (N=20, D=128, ragged)"

    # Narrow D with a batch that cannot pack evenly (fallback path + ragged tail).
    N3, D3 = 10, 32
    z3 = jax.random.normal(k_z3, (N3, D3), dtype=jnp.float32)
    out3 = jax.block_until_ready(planar_flow(z3, w, u, b))
    ref3 = planar_flow_ref(z3, w, u, b)
    assert out3.shape == (N3, D3)
    assert jnp.allclose(out3, ref3, atol=1e-5, rtol=1e-5), "mismatch (N=10, D=32, fallback)"

    print("KERNEL_OK")
</pallas_src>

<mosaic_0001>
module attributes {stable_mosaic.version = 11 : i64} {
  func.func @planar_flow_packed_kernel(%arg0: i32, %arg1: memref<4x128xf32, #tpu.memory_space<vmem>>, %arg2: memref<128x128xf32, #tpu.memory_space<vmem>>, %arg3: memref<1x128xf32, #tpu.memory_space<vmem>>, %arg4: memref<1xf32, #tpu.memory_space<smem>>, %arg5: memref<4x128xf32, #tpu.memory_space<vmem>>) attributes {dimension_semantics = [#tpu.dimension_semantics<parallel>], iteration_bounds = array<i64: 1>, scalar_prefetch = 0 : i64, scratch_operands = 0 : i64, tpu.core_type = #tpu.core_type<tc>, window_params = [{transform_indices = @transform_0, window_bounds = array<i64: 4, 128>}, {pipeline_mode = #tpu.pipeline_mode<synchronous>, transform_indices = @transform_1, window_bounds = array<i64: 128, 128>}, {pipeline_mode = #tpu.pipeline_mode<synchronous>, transform_indices = @transform_2, window_bounds = array<i64: 1, 128>}, {transform_indices = @transform_3, window_bounds = array<i64: 1>}, {transform_indices = @transform_4, window_bounds = array<i64: 4, 128>}]} {
    %c0 = arith.constant 0 : index
    %c0_0 = arith.constant 0 : index
    %0 = vector.load %arg1[%c0, %c0_0] : memref<4x128xf32, #tpu.memory_space<vmem>>, vector<4x128xf32>
    %c0_1 = arith.constant 0 : index
    %c0_2 = arith.constant 0 : index
    %1 = vector.load %arg2[%c0_1, %c0_2] : memref<128x128xf32, #tpu.memory_space<vmem>>, vector<128x128xf32>
    %c0_3 = arith.constant 0 : index
    %c0_4 = arith.constant 0 : index
    %2 = vector.load %arg3[%c0_3, %c0_4] : memref<1x128xf32, #tpu.memory_space<vmem>>, vector<1x128xf32>
    %c0_5 = arith.constant 0 : index
    %3 = memref.load %arg4[%c0_5] : memref<1xf32, #tpu.memory_space<smem>>
    %cst = arith.constant dense<0.000000e+00> : vector<4x128xf32>
    %4 = tpu.matmul %0, %1, %cst {dimension_numbers = #tpu.dot_dimension_numbers<[1], [0], [0], [1], [0, 0, 1, 1], [], []>} : vector<4x128xf32>, vector<128x128xf32>, vector<4x128xf32> -> vector<4x128xf32>
    %5 = vector.broadcast %3 : f32 to vector<4x128xf32>
    %6 = arith.addf %4, %5 : vector<4x128xf32>
    %7 = math.tanh %6 : vector<4x128xf32>
    %8 = vector.broadcast %2 : vector<1x128xf32> to vector<4x128xf32>
    %9 = arith.mulf %8, %7 : vector<4x128xf32>
    %10 = arith.addf %0, %9 : vector<4x128xf32>
    %c0_6 = arith.constant 0 : index
    %c0_7 = arith.constant 0 : index
    %11 = vector.load %arg5[%c0_6, %c0_7] : memref<4x128xf32, #tpu.memory_space<vmem>>, vector<4x128xf32>
    tpu.vector_store %arg5[%c0_6, %c0_7], %10 {strides = array<i32>} : memref<4x128xf32, #tpu.memory_space<vmem>>, vector<4x128xf32>,
    return
  }
  func.func @transform_0(%arg0: i32) -> (i32, i32) {
    %c0_i32 = arith.constant 0 : i32
    %c0_i32_0 = arith.constant 0 : i32
    return %arg0, %c0_i32 : i32, i32
  }
  func.func @transform_1(%arg0: i32) -> (i32, i32) {
    %c0_i32 = arith.constant 0 : i32
    %c0_i32_0 = arith.constant 0 : i32
    %c0_i32_1 = arith.constant 0 : i32
    return %c0_i32, %c0_i32_0 : i32, i32
  }
  func.func @transform_2(%arg0: i32) -> (i32, i32) {
    %c0_i32 = arith.constant 0 : i32
    %c0_i32_0 = arith.constant 0 : i32
    %c0_i32_1 = arith.constant 0 : i32
    return %c0_i32, %c0_i32_0 : i32, i32
  }
  func.func @transform_3(%arg0: i32) -> i32 {
    %c0_i32 = arith.constant 0 : i32
    %c0_i32_0 = arith.constant 0 : i32
    return %c0_i32 : i32
  }
  func.func @transform_4(%arg0: i32) -> (i32, i32) {
    %c0_i32 = arith.constant 0 : i32
    %c0_i32_0 = arith.constant 0 : i32
    return %arg0, %c0_i32 : i32, i32
  }
}

</mosaic_0001>

<bundles_post_ra>
// kernel: tpu_custom_call.1
= control target key start
LH: loop header
LB: loop body
LE: loop exit
PB: predicated region body
PF: predicated region fallthrough
CT: control target
= control target key end

     0   :  { %10 = vsyncpa [#allocation4], 0  ;;  %s245_s0 = inlined_call_operand.hbm [shape: f32[4,128], index: 0, kind: input, shape index: {}]   ;;  %s246_s1 = inlined_call_operand.hbm [shape: f32[128,128], index: 1, kind: input, shape index: {}]   ;;  %s247_s2 = inlined_call_operand.vmem [shape: f32[1,128], index: 2, kind: input, shape index: {}]   ;;  %s248_s3 = inlined_call_operand.<no memory space> [shape: f32[1], index: 3, kind: input, shape index: {}]   ;;  %s249_s4 = inlined_call_operand.hbm [shape: f32[4,128], index: 4, kind: output, shape index: {}]  }
   0x1   :  { %11 = vsyncpa [#allocation7], 0 }
   0x2   :  { %12 = vsyncpa [#allocation5], 0  ;;  %s18_s17 = sshll.u32 %s245_s0, 4  ;;  %s200_s18 = smov [#allocation3]   ;;  %s19_s17 = int_to_ptr.hbm [resolvable:$true] %s18_s17 }
   0x3   :  { %s20_s19 = sshll.u32 %s200_s18, 4  ;;  %s28_s22 = sshll.u32 %s246_s1, 4  ;;  %s21_s19 = int_to_ptr.vmem [resolvable:$true] %s20_s19  ;;  %s29_s22 = int_to_ptr.hbm [resolvable:$true] %s28_s22 }
   0x4   :  { %23 = dma.hbm_to_vmem [thread:$0]  %s19_s17, 64, %s21_s19, [#allocation4]  }
   0x5   :  { %s201_s23 = smov [#allocation6]   ;;  %s202_s25 = smov 128  }
   0x6   :  { %s30_s24 = sshll.u32 %s201_s23, 4  ;;  %s203_s26 = smov 8   ;;  %s31_s24 = int_to_ptr.vmem [resolvable:$true] %s30_s24 }
   0x7   :  { %36 = dma.hbm_to_vmem [thread:$0]  %s29_s22, 2048, %s31_s24, [#allocation7], %s202_s25, %s202_s25, %s203_s26  }
   0x8   :  { %194 = dma.done.wait [#allocation4], 64  }
   0x9   :  { %195 = vsyncadd [#allocation4], 4294967232 }
   0xa   :  { %196 = dma.done.wait [#allocation7], 2048  }
   0xb   :  { %197 = vsyncadd [#allocation7], 4294965248  ;;  %v65_v0 = vld [vmem:[#allocation6 + $0x78] sm:$0xff]  ;;  %v64_v1 = vld [vmem:[#allocation6 + $0x70] sm:$0xff]  ;;  %v68_v17 = vstv %s248_s3  ;;  %s204_s29 = smov [#allocation8]   ;;  %s103_s7 = sshll.u32 %s249_s4, 4  ;;  %s104_s7 = int_to_ptr.hbm [resolvable:$true] %s103_s7 }
   0xc   :  { %69 = vmatpush.msra.mxu0 %v65_v0  ;;  %v63_v2 = vld [vmem:[#allocation6 + $0x68] sm:$0xff]  ;;  %v62_v3 = vld [vmem:[#allocation6 + $0x60] sm:$0xff]  ;;  %v61_v4 = vld [vmem:[#allocation6 + $0x58] sm:$0xff]  ;;  %s101_s30 = sshll.u32 %s204_s29, 4  ;;  %s102_s30 = int_to_ptr.vmem [resolvable:$true] %s101_s30 }
   0xd   :  { %v60_v5 = vld [vmem:[#allocation6 + $0x50] sm:$0xff]  ;;  %v59_v6 = vld [vmem:[#allocation6 + $0x48] sm:$0xff]  ;;  %v58_v7 = vld [vmem:[#allocation6 + $0x40] sm:$0xff] }
   0xe   :  { %70 = vmatpush.msra.mxu0 %v64_v1  ;;  %v57_v8 = vld [vmem:[#allocation6 + $0x38] sm:$0xff]  ;;  %v56_v9 = vld [vmem:[#allocation6 + $0x30] sm:$0xff]  ;;  %v55_v10 = vld [vmem:[#allocation6 + $0x28] sm:$0xff] }
   0xf   :  { %v54_v11 = vld [vmem:[#allocation6 + $0x20] sm:$0xff]  ;;  %v53_v12 = vld [vmem:[#allocation6 + $0x18] sm:$0xff]  ;;  %v52_v13 = vld [vmem:[#allocation6 + $0x10] sm:$0xff] }
  0x10   :  { %71 = vmatpush.msra.mxu0 %v63_v2  ;;  %v51_v14 = vld [vmem:[#allocation6 + $0x8] sm:$0xff]  ;;  %v50_v15 = vld [vmem:[#allocation6] sm:$0xff]  ;;  %v49_v16 = vld [vmem:[#allocation3] sm:$0xf] }
  0x11   :  { %v119_v20 = vld [vmem:[%s247_s2] ss:$0 sm:$0xff] }
  0x12   :  { %72 = vmatpush.msra.mxu0 %v62_v3 }
  0x14   :  { %73 = vmatpush.msra.mxu0 %v61_v4 }
  0x16   :  { %74 = vmatpush.msra.mxu0 %v60_v5 }
  0x18   :  { %75 = vmatpush.msra.mxu0 %v59_v6 }
  0x1a   :  { %76 = vmatpush.msra.mxu0 %v58_v7 }
  0x1c   :  { %77 = vmatpush.msra.mxu0 %v57_v8 }
  0x1e   :  { %78 = vmatpush.msra.mxu0 %v56_v9 }
  0x20   :  { %79 = vmatpush.msra.mxu0 %v55_v10 }
  0x22   :  { %80 = vmatpush.msra.mxu0 %v54_v11 }
  0x24   :  { %81 = vmatpush.msra.mxu0 %v53_v12 }
  0x26   :  { %82 = vmatpush.msra.mxu0 %v52_v13 }
  0x28   :  { %83 = vmatpush.msra.mxu0 %v51_v14 }
  0x2a   :  { %84 = vmatpush.msra.mxu0 %v50_v15 }
  0x2b   :  { %85 = vmatmul.f32.vlgmr.msra.gmra.mxu0 %v49_v16 }
  0xa8   :  { %v86_v18 = vpop.f32.mrf.mxu0 }
  0xa9   :  { %v87_v19 = vadd.f32 %v86_v18, %v68_v17 }
  0xab   :  { %120 = vtanh.f32 %v87_v19 }
  0xb1   :  { %v121_v21 = vpop.eup %120 }
  0xb2   :  { %v93_v22 = vmul.f32 %v121_v21, %v119_v20 }
  0xb4   :  { %v94_v23 = vadd.f32 %v93_v22, %v49_v16 }
  0xb6   :  { %95 = vst [vmem:[#allocation8] sm:$0xf] %v94_v23 }
  0xb7   :  { %106 = dma.vmem_to_hbm [thread:$0]  %s102_s30, 64, %s104_s7, [#allocation5]  }
  0xb8   :  { %198 = dma.done.wait [#allocation5], 64  }
  0xb9   :  { %199 = vsyncadd [#allocation5], 4294967232 }
  0xba   :  { %111 = vsyncpa [#allocation4], 1 }
  0xbb   :  { %112 = vsyncpa [#allocation7], 1 }
  0xbc   :  { %113 = vsyncpa [#allocation5], 1 }

</bundles_post_ra>
